<compile_context>
chip_gen: v7x
topology: tpu7x:2x2x1
jax: 0.10.0
libtpu: 0.0.40
codegen_flags: <defaults>
</compile_context>

<pallas_src>
import jax
import jax.numpy as jnp
from jax.experimental import pallas as pl
from jax.experimental.pallas import tpu as pltpu


def gcn_kernel(graph_ref, x_ref, wt_ref, bias_ref, out_ref):
    TB, TN, N = graph_ref.shape            # graph block: (tb, tn, N_pad)
    D_in = x_ref.shape[2]                  # x block:     (tb, N_pad, D_in)
    D_out = wt_ref.shape[1]                # wt:          (D_in, D_out_pad)

    g = graph_ref[...]
    x = x_ref[...]
    wt = wt_ref[...]
    b = bias_ref[...].astype(jnp.float32)  # (1, 1, D_out_pad)

    # Pick matmul order so the O(N^2) aggregation touches min(D_in, D_out).
    if D_out >= D_in:
        # Aggregate first: (g @ x) @ Wt.
        gx = jnp.einsum("bnm,bmd->bnd", g, x,
                        preferred_element_type=jnp.float32)      # (TB, TN, D_in)
        gh = jnp.dot(gx.reshape(TB * TN, D_in).astype(wt.dtype), wt,
                     preferred_element_type=jnp.float32
                     ).reshape(TB, TN, D_out)                    # (TB, TN, D_out)
    else:
        # Linear first: g @ (x @ Wt).
        NP = x.shape[1]
        h = jnp.dot(x.reshape(TB * NP, D_in), wt,
                    preferred_element_type=jnp.float32
                    ).reshape(TB, NP, D_out)
        gh = jnp.einsum("bnm,bmo->bno", g, h.astype(g.dtype),
                        preferred_element_type=jnp.float32)

    # Normalize AFTER aggregation (exact) and add the bias after normalization.
    row_sum = jnp.sum(g, axis=2, keepdims=True,
                      dtype=jnp.float32)                         # (TB, TN, 1)
    inv = pl.reciprocal(row_sum, approx=True)                    # EUP slot
    inv = inv * (2.0 - row_sum * inv)                            # 1 Newton step
    out_ref[...] = (gh * inv + b).astype(out_ref.dtype)


def _round_up(v, m):
    return ((v + m - 1) // m) * m


def _divisors_desc(n):
    return [d for d in range(n, 0, -1) if n % d == 0]


def _choose_tiles(B, N_pad, D_in, D_out_pad, in_itemsize, budget_bytes, max_rows):
    """Pick (tb, tn) so that ALL VMEM consumers fit the budget."""

    def footprint(tb, tn):
        g = 2 * tb * tn * N_pad * in_itemsize          # graph double buffer
        x = 2 * tb * N_pad * D_in * in_itemsize        # feature double buffer
        o = 2 * tb * tn * D_out_pad * 4                # output double buffer
        w = 2 * D_in * D_out_pad * in_itemsize         # weights (worst case 2x)
        bias = 2 * 8 * max(D_out_pad, 128) * 4         # padded bias block
        # f32 in-kernel intermediates (h / gx and gh), conservative upper bound
        inter = (tb * N_pad * D_out_pad * 4
                 + tb * tn * (D_in + D_out_pad) * 4)
        return g + x + o + w + bias + inter

    # Keep the batch grid axis >= 2 when possible (v7x megacore + prefetch).
    tb_cap = B if B == 1 else max(1, B // 2)

    best = None
    for tb in _divisors_desc(B):
        if tb > tb_cap:
            continue
        for tn in _divisors_desc(N_pad):
            if tn != N_pad and tn % 8 != 0:
                continue
            if tb * tn > max_rows:
                continue
            if footprint(tb, tn) <= budget_bytes:
                if best is None or tb * tn > best[0] * best[1]:
                    best = (tb, tn)
                break  # largest feasible tn for this tb
    if best is None:
        # TODO(synk): also tile the contraction (column) axis of the adjacency
        # for graphs where even a single (1, 8, N) strip exceeds the budget.
        best = (1, 8 if N_pad % 8 == 0 else N_pad)
    return best


def gcn_forward(x, graph, weight, bias, *, compute_dtype=None,
                max_rows_per_step=2048):
    """x: (B, N, D_in), graph: (B, N, N), weight: (D_out, D_in), bias: (D_out,).

    compute_dtype=jnp.bfloat16 halves adjacency HBM traffic and uses the bf16
    MXU; only use when the accuracy budget allows (~1e-2), default is float32.
    """
    B, N, D_in = x.shape
    D_out = weight.shape[0]
    assert graph.shape == (B, N, N)

    out_dtype = x.dtype
    in_dtype = jnp.dtype(compute_dtype) if compute_dtype is not None else jnp.dtype(x.dtype)

    # Lane-dense output: pad D_out to a multiple of 128 (zero columns, sliced
    # off below).  Sublane-align the node axis so the in-kernel flatten is a
    # free reshape.
    D_out_p = _round_up(D_out, 128)
    N_p = _round_up(N, 8)

    wt = jnp.zeros((D_in, D_out_p), in_dtype)
    wt = wt.at[:, :D_out].set(jnp.asarray(weight).T.astype(in_dtype))
    bias_p = jnp.zeros((1, 1, D_out_p), jnp.float32)
    bias_p = bias_p.at[0, 0, :D_out].set(jnp.asarray(bias).astype(jnp.float32))

    x_p = x.astype(in_dtype)
    g_p = graph.astype(in_dtype)
    if N_p != N:
        x_p = jnp.pad(x_p, ((0, 0), (0, N_p - N), (0, 0)))
        g_p = jnp.pad(g_p, ((0, 0), (0, N_p - N), (0, N_p - N)))

    # Generation-aware VMEM budget (v5e/v6e 128 MiB, v7x 64 MiB physical);
    # keep well under the scoped limit we request explicitly below.
    try:
        vmem_cap = int(pltpu.get_tpu_info().vmem_capacity_bytes)
    except Exception:
        vmem_cap = 64 << 20  # conservative (v7x per-TensorCore)
    vmem_limit = int(min(vmem_cap // 2, 32 << 20))
    budget = (vmem_limit * 3) // 4

    tb, tn = _choose_tiles(B, N_p, D_in, D_out_p, jnp.dtype(in_dtype).itemsize,
                           budget, max_rows_per_step)

    out_p = pl.pallas_call(
        gcn_kernel,
        out_shape=jax.ShapeDtypeStruct((B, N_p, D_out_p), out_dtype),
        grid_spec=pltpu.PrefetchScalarGridSpec(
            num_scalar_prefetch=0,
            grid=(B // tb, N_p // tn),
            in_specs=[
                pl.BlockSpec((tb, tn, N_p), lambda i, j: (i, j, 0)),
                pl.BlockSpec((tb, N_p, D_in), lambda i, j: (i, 0, 0)),
                pl.BlockSpec((D_in, D_out_p), lambda i, j: (0, 0)),
                pl.BlockSpec((1, 1, D_out_p), lambda i, j: (0, 0, 0)),
            ],
            out_specs=pl.BlockSpec((tb, tn, D_out_p), lambda i, j: (i, j, 0)),
        ),
        compiler_params=pltpu.CompilerParams(
            dimension_semantics=("parallel", "parallel"),
            vmem_limit_bytes=vmem_limit),
    )(g_p, x_p, wt, bias_p)

    return out_p[:, :N, :D_out]


def gcn_reference(x, graph, weight, bias):
    h = jnp.einsum("bnd,od->bno", x, weight) + bias
    g_norm = graph / jnp.sum(graph, axis=2, keepdims=True)
    return jnp.einsum("bnm,bmo->bno", g_norm, h)


if __name__ == "__main__":
    # Small shapes consistent with the module's forward:
    B, N, D_in, D_out = 2, 8, 16, 32

    key = jax.random.PRNGKey(0)
    k_x, k_g, k_w, k_b = jax.random.split(key, 4)

    x = jax.random.normal(k_x, (B, N, D_in), dtype=jnp.float32)
    # Positive adjacency so row sums are nonzero (like a weighted graph).
    graph = jax.random.uniform(k_g, (B, N, N), dtype=jnp.float32,
                               minval=0.1, maxval=1.0)

    # Deterministic Linear(input_size, output_size) params (kaiming-uniform-like).
    bound = 1.0 / jnp.sqrt(jnp.float32(D_in))
    weight = jax.random.uniform(k_w, (D_out, D_in), dtype=jnp.float32,
                                minval=-bound, maxval=bound)
    bias = jax.random.uniform(k_b, (D_out,), dtype=jnp.float32,
                              minval=-bound, maxval=bound)

    out = jax.block_until_ready(gcn_forward(x, graph, weight, bias))
    ref = jax.block_until_ready(gcn_reference(x, graph, weight, bias))

    assert out.shape == (B, N, D_out)
    assert jnp.allclose(out, ref, atol=1e-4, rtol=1e-4), "mismatch vs reference"
    print("KERNEL_OK")
</pallas_src>

<mosaic_0001>
module attributes {stable_mosaic.version = 11 : i64} {
  func.func @gcn_kernel(%arg0: i32, %arg1: i32, %arg2: memref<1x8x8xf32, #tpu.memory_space<vmem>>, %arg3: memref<1x8x16xf32, #tpu.memory_space<vmem>>, %arg4: memref<16x128xf32, #tpu.memory_space<vmem>>, %arg5: memref<1x1x128xf32, #tpu.memory_space<vmem>>, %arg6: memref<1x8x128xf32, #tpu.memory_space<vmem>>) attributes {dimension_semantics = [#tpu.dimension_semantics<parallel>, #tpu.dimension_semantics<parallel>], iteration_bounds = array<i64: 2, 1>, scalar_prefetch = 0 : i64, scratch_operands = 0 : i64, tpu.core_type = #tpu.core_type<tc>, window_params = [{transform_indices = @transform_0, window_bounds = array<i64: 1, 8, 8>}, {transform_indices = @transform_1, window_bounds = array<i64: 1, 8, 16>}, {pipeline_mode = #tpu.pipeline_mode<synchronous>, transform_indices = @transform_2, window_bounds = array<i64: 16, 128>}, {pipeline_mode = #tpu.pipeline_mode<synchronous>, transform_indices = @transform_3, window_bounds = array<i64: 1, 1, 128>}, {transform_indices = @transform_4, window_bounds = array<i64: 1, 8, 128>}]} {
    %c0 = arith.constant 0 : index
    %c0_0 = arith.constant 0 : index
    %c0_1 = arith.constant 0 : index
    %0 = vector.load %arg2[%c0, %c0_0, %c0_1] : memref<1x8x8xf32, #tpu.memory_space<vmem>>, vector<1x8x8xf32>
    %c0_2 = arith.constant 0 : index
    %c0_3 = arith.constant 0 : index
    %c0_4 = arith.constant 0 : index
    %1 = vector.load %arg3[%c0_2, %c0_3, %c0_4] : memref<1x8x16xf32, #tpu.memory_space<vmem>>, vector<1x8x16xf32>
    %c0_5 = arith.constant 0 : index
    %c0_6 = arith.constant 0 : index
    %2 = vector.load %arg4[%c0_5, %c0_6] : memref<16x128xf32, #tpu.memory_space<vmem>>, vector<16x128xf32>
    %c0_7 = arith.constant 0 : index
    %c0_8 = arith.constant 0 : index
    %c0_9 = arith.constant 0 : index
    %3 = vector.load %arg5[%c0_7, %c0_8, %c0_9] : memref<1x1x128xf32, #tpu.memory_space<vmem>>, vector<1x1x128xf32>
    "tpu.trace_start"() <{level = 10 : i32, message = "bnm,bmd->bnd"}> : () -> ()
    %cst = arith.constant dense<0.000000e+00> : vector<1x8x16xf32>
    %4 = tpu.matmul %0, %1, %cst {dimension_numbers = #tpu.dot_dimension_numbers<[2], [1], [1], [2], [0, 0, 0, 1, 1, 2], [0], [0]>} : vector<1x8x8xf32>, vector<1x8x16xf32>, vector<1x8x16xf32> -> vector<1x8x16xf32>
    "tpu.trace_stop"() : () -> ()
    %5 = vector.shape_cast %4 : vector<1x8x16xf32> to vector<8x16xf32>
    %cst_10 = arith.constant dense<0.000000e+00> : vector<8x128xf32>
    %6 = tpu.matmul %5, %2, %cst_10 {dimension_numbers = #tpu.dot_dimension_numbers<[1], [0], [0], [1], [0, 0, 1, 1], [], []>} : vector<8x16xf32>, vector<16x128xf32>, vector<8x128xf32> -> vector<8x128xf32>
    %7 = vector.shape_cast %6 : vector<8x128xf32> to vector<1x8x128xf32>
    %cst_11 = arith.constant dense<0.000000e+00> : vector<1x8xf32>
    %8 = vector.multi_reduction <add>, %0, %cst_11 [2] : vector<1x8x8xf32> to vector<1x8xf32>
    %9 = vector.shape_cast %8 : vector<1x8xf32> to vector<1x8x1xf32>
    %10 = tpu.reciprocal %9 {approx = true} : vector<1x8x1xf32> -> vector<1x8x1xf32>
    %11 = arith.mulf %9, %10 : vector<1x8x1xf32>
    %cst_12 = arith.constant 2.000000e+00 : f32
    %12 = vector.broadcast %cst_12 : f32 to vector<1x8x1xf32>
    %13 = arith.subf %12, %11 : vector<1x8x1xf32>
    %14 = arith.mulf %10, %13 : vector<1x8x1xf32>
    %15 = vector.broadcast %14 : vector<1x8x1xf32> to vector<1x8x128xf32>
    %16 = arith.mulf %7, %15 : vector<1x8x128xf32>
    %17 = vector.broadcast %3 : vector<1x1x128xf32> to vector<1x8x128xf32>
    %18 = arith.addf %16, %17 : vector<1x8x128xf32>
    %c0_13 = arith.constant 0 : index
    %c0_14 = arith.constant 0 : index
    %c0_15 = arith.constant 0 : index
    %19 = vector.load %arg6[%c0_13, %c0_14, %c0_15] : memref<1x8x128xf32, #tpu.memory_space<vmem>>, vector<1x8x128xf32>
    tpu.vector_store %arg6[%c0_13, %c0_14, %c0_15], %18 {strides = array<i32>} : memref<1x8x128xf32, #tpu.memory_space<vmem>>, vector<1x8x128xf32>,
    return
  }
  func.func @transform_0(%arg0: i32, %arg1: i32) -> (i32, i32, i32) {
    %c0_i32 = arith.constant 0 : i32
    %c0_i32_0 = arith.constant 0 : i32
    return %arg0, %arg1, %c0_i32 : i32, i32, i32
  }
  func.func @transform_1(%arg0: i32, %arg1: i32) -> (i32, i32, i32) {
    %c0_i32 = arith.constant 0 : i32
    %c0_i32_0 = arith.constant 0 : i32
    %c0_i32_1 = arith.constant 0 : i32
    return %arg0, %c0_i32, %c0_i32_0 : i32, i32, i32
  }
  func.func @transform_2(%arg0: i32, %arg1: i32) -> (i32, i32) {
    %c0_i32 = arith.constant 0 : i32
    %c0_i32_0 = arith.constant 0 : i32
    %c0_i32_1 = arith.constant 0 : i32
    return %c0_i32, %c0_i32_0 : i32, i32
  }
  func.func @transform_3(%arg0: i32, %arg1: i32) -> (i32, i32, i32) {
    %c0_i32 = arith.constant 0 : i32
    %c0_i32_0 = arith.constant 0 : i32
    %c0_i32_1 = arith.constant 0 : i32
    %c0_i32_2 = arith.constant 0 : i32
    return %c0_i32, %c0_i32_0, %c0_i32_1 : i32, i32, i32
  }
  func.func @transform_4(%arg0: i32, %arg1: i32) -> (i32, i32, i32) {
    %c0_i32 = arith.constant 0 : i32
    %c0_i32_0 = arith.constant 0 : i32
    return %arg0, %arg1, %c0_i32 : i32, i32, i32
  }
}

</mosaic_0001>

<bundles_post_ra>
// kernel: tpu_custom_call.1
= control target key start
LH: loop header
LB: loop body
LE: loop exit
PB: predicated region body
PF: predicated region fallthrough
CT: control target
= control target key end

     0   :  { %s1171_s0 = inlined_call_operand.hbm [shape: f32[2,8,8], index: 0, kind: input, shape index: {}]   ;;  %s1172_s1 = inlined_call_operand.hbm [shape: f32[2,8,16], index: 1, kind: input, shape index: {}]   ;;  %s1173_s2 = inlined_call_operand.hbm [shape: f32[16,128], index: 2, kind: input, shape index: {}]   ;;  %s1174_s3 = inlined_call_operand.vmem [shape: f32[1,1,128], index: 3, kind: input, shape index: {}]   ;;  %s1175_s4 = inlined_call_operand.hbm [shape: f32[2,8,128], index: 4, kind: output, shape index: {}]  }
   0x1   :  { %1182 = sst [smem:[#allocation15_spill]] %s1173_s2 }
   0x2   :  { %9 = vsyncpa [#allocation3], 0 }
   0x3   :  { %11 = vsyncpa [#allocation3 + $0x1], 0 }
   0x4   :  { %12 = vsyncpa [#allocation6], 0 }
   0x5   :  { %14 = vsyncpa [#allocation6 + $0x1], 0 }
   0x6   :  { %15 = vsyncpa [#allocation4], 0 }
   0x7   :  { %17 = vsyncpa [#allocation4 + $0x1], 0  ;;  %s917_s15 = smov 0   ;;  %s919_s16 = smov 0  }
   0x8   :  { %s921_s17 = smov 0   ;;  %s923_s18 = smov 0  }
   0x9   :  { %s925_s19 = smov 0   ;;  %s927_s20 = smov 0  }
   0xa LB: > { %1183 = sst [smem:[#allocation13_spill]] %s877_s19  ;;  %s948_s21 = sadd.s32 4294967295, %s881_s20   ;;  %s881_s20 = sphi %s927_s20, %s23_s20   ;;  %s877_s19 = sphi %s925_s19, %s1202_s19   ;;  %s873_s18 = sphi %s923_s18, %s1201_s18   ;;  %s869_s17 = sphi %s921_s17, %s1205_s17   ;;  %s865_s16 = sphi %s919_s16, %s1204_s16   ;;  %s861_s15 = sphi %s917_s15, %s1203_s15  }
   0xb   : > { %s578_s22 = sadd.s32 4294967294, %s881_s20   ;;  %p57_p0 = scmp.ne.s32.totalorder %s865_s16, %s861_s15 }
   0xc   : > { %p1176_p1 = scmp.eq.s32.totalorder %s948_s21, 0  ;;  %p157_p3 = scmp.eq.s32.totalorder %s578_s22, 1 }
   0xd   : > { %p579_p5 = scmp.ge.s32.totalorder %s881_s20, 1  ;;  %p164_p7 = scmp.lt.s32.totalorder %s881_s20, 3 }
   0xe   : > { %p957_p4 = por %p1176_p1, %p57_p0  ;;  %p962_p6 = por %p157_p3, %p57_p0 }
   0xf   : > { %p967_p8 = pnand %p579_p5, %p164_p7  ;;  %s883_s26 = smov [#allocation7]  }
  0x10   : > { %s1184_s23 = scalar_select %p957_p4, 1, 0 }
  0x11   : > { %s1185_s24 = scalar_select %p962_p6, 1, 0 }
  0x12   : > { %s1186_s25 = scalar_select %p967_p8, 1, 0 }
  0x13   : > { %s176_s27 = sshll.u32 %s883_s26, 4  ;;  %p628_p9 = pneg %p967_p8  ;;  %s177_s27 = int_to_ptr.vmem [resolvable:$true] %s176_s27 }
  0x14   : > { %s35_s29 = sadd.s32 1, %s877_s19  ;;  %s1188_s2 = sld [smem:[#allocation15_spill]] }
  0x15   : > { %p976_p11 = pnand %p628_p9, %p1176_p1 }
  0x17   : > { %p705_p13 = pneg %p976_p11 }
  0x1a   : > { %s703_s6 = scalar_lea.hbm %s1188_s2, 256 }
  0x1b   : > { %p704_p12 = scmp.ne.s32.totalorder %s1188_s2, %s703_s6  ;;  %p710_p5 = scmp.lt.u32.totalorder %s703_s6, %s1188_s2 }
  0x1d   : > { %p706_p0 = pnand %p705_p13, %p704_p12 }
  0x1f   : > { %p707_p3 = pneg %p706_p0 }
  0x21   : > { %p712_p7 = pnand %p710_p5, %p707_p3 }
  0x23   : > { %715 = shalt.err (!%p712_p7)
}
  0x24   : > { %s716_s11 = scalar_lea.vmem %s177_s27, 256  ;;  %p724_p2 = scmp.lt.s32.totalorder %s177_s27, %s177_s27 }
  0x25   : > { %p717_p9 = scmp.ne.s32.totalorder %s177_s27, %s716_s11  ;;  %p725_p6 = scmp.lt.s32.totalorder %s716_s11, %s716_s11 }
  0x27   : > { %p719_p10 = pnand %p717_p9, %p705_p13  ;;  %p726_p4 = por %p725_p6, %p724_p2 }
  0x29   : > { %p720_p1 = pneg %p719_p10 }
  0x2b   : > { %p727_p8 = pnand %p726_p4, %p720_p1 }
  0x2d   : > { %730 = shalt.err (!%p727_p8)
}
  0x2e   : > { %s884_s12 = smov 128   ;;  %s885_s13 = smov 8  }
  0x2f   : > { %631 = dma.hbm_to_vmem [thread:$0]  (!%p976_p11), %s1188_s2, 256, %s177_s27, [#allocation6], %s884_s12, %s884_s12, %s885_s13  }
  0x30   : > { %p37_p1 = scmp.ge.s32.totalorder %s35_s29, 2  ;;  %s44_s26 = sadd.s32 1, %s869_s17 }
  0x31   : > { %p51_p2 = scmp.ne.s32.totalorder %s869_s17, %s865_s16  ;;  %p52_p4 = scmp.eq.s32.totalorder %s881_s20, 0 }
  0x32   : > { %s1207_s29 = smov (%p37_p1, %s35_s29), 0  ;;  %p1191_p8 = scmp.eq.s32.totalorder %s948_s21, 1 }
  0x33   : > { %1189 = sst [smem:[#allocation14_spill]] %s1207_s29  ;;  %p1003_p6 = por %p52_p4, %p51_p2 }
  0x34   : > { %p1009_p10 = por %p1191_p8, %p51_p2  ;;  %s39_s5 = ssub.s32 %s877_s19, %s1207_s29 }
  0x35   : > { %p644_p11 = scmp.lt.s32.totalorder %s881_s20, 2  ;;  %p42_p12 = scmp.eq.s32.totalorder %s39_s5, 0 }
  0x36   : > { %s1192_s28 = scalar_select %p1009_p10, 1, 0 }
  0x37   : > { %s193_s27 = sand.u32 1, %s869_s17   ;;  %s583_s8 = sshll.u32 %s877_s19, 7 }
  0x38   : > { %s1017_s6 = sshll.u32 %s193_s27, 3  ;;  %s1026_s11 = scalar_lea.hbm %s1171_s0, %s583_s8 }
  0x39   : > { %s1020_s7 = scalar_select %p42_p12, %s869_s17, %s44_s26  }
  0x3a   : > { %s197_s12 = scalar_lea.vmem [#allocation2], %s1017_s6  ;;  %p1033_p13 = pnand %p644_p11, %p1003_p6 }
  0x3b   : > { %s205_s13 = sshll.u32 %s197_s12, 4  ;;  %s1040_s5 = scalar_lea.hbm %s1172_s1, %s583_s8  ;;  %s1029_s13 = int_to_ptr.vmem [resolvable:$true] %s205_s13 }
  0x3c   : > { %s212_s9 = sand.u32 1, %s881_s20   ;;  %s194_s10 = scalar_lea.sflag [#allocation3], %s193_s27 }
  0x3d   : > { %s731_s2 = scalar_lea.hbm %s1026_s11, 128  ;;  %p733_p3 = pneg %p1033_p13 }
  0x3e   : > { %p732_p0 = scmp.ne.s32.totalorder %s1026_s11, %s731_s2  ;;  %s736_s29 = scalar_lea.hbm %s1171_s0, 256 }
  0x3f   : > { %p737_p9 = scmp.lt.u32.totalorder %s1026_s11, %s1171_s0  ;;  %p738_p1 = scmp.lt.u32.totalorder %s736_s29, %s731_s2 }
  0x40   : > { %p734_p5 = pnand %p733_p3, %p732_p0  ;;  %p740_p4 = scmp.lt.u32.totalorder %s731_s2, %s1026_s11 }
  0x41   : > { %p739_p2 = por %p738_p1, %p737_p9 }
  0x42   : > { %p735_p7 = pneg %p734_p5 }
  0x43   : > { %p741_p6 = por %p740_p4, %p739_p2 }
  0x45   : > { %p742_p8 = pnand %p741_p6, %p735_p7 }
  0x47   : > { %745 = shalt.err (!%p742_p8)
}
  0x48   : > { %s746_s27 = scalar_lea.vmem %s1029_s13, 128  ;;  %s886_s8 = smov [#allocation2]  }
  0x49   : > { %p747_p11 = scmp.ne.s32.totalorder %s1029_s13, %s746_s27  ;;  %s751_s26 = sshll.u32 %s886_s8, 4  ;;  %s752_s26 = int_to_ptr.vmem [resolvable:$false] %s751_s26 }
  0x4a   : > { %s753_s19 = scalar_lea.vmem %s752_s26, 256  ;;  %p754_p5 = scmp.lt.s32.totalorder %s1029_s13, %s752_s26 }
  0x4b   : > { %p749_p12 = pnand %p747_p11, %p733_p3  ;;  %p755_p9 = scmp.lt.s32.totalorder %s753_s19, %s746_s27 }
  0x4d   : > { %p750_p0 = pneg %p749_p12  ;;  %p756_p1 = por %p755_p9, %p754_p5 }
  0x4f   : > { %p757_p2 = pnand %p756_p1, %p750_p0 }
  0x51   : > { %760 = shalt.err (!%p757_p2)
}
  0x52   : > { %635 = dma.hbm_to_vmem [thread:$0]  (!%p1033_p13), %s1026_s11, 128, %s1029_s13, %s194_s10  }
  0x53   : > { %s216_s2 = scalar_lea.vmem [#allocation5], %s1017_s6  ;;  %s213_s30 = scalar_lea.sflag [#allocation6], %s212_s9 }
  0x54   : > { %s223_s29 = sshll.u32 %s216_s2, 4  ;;  %s761_s12 = scalar_lea.hbm %s1040_s5, 128  ;;  %s224_s29 = int_to_ptr.vmem [resolvable:$true] %s223_s29 }
  0x55   : > { %p762_p7 = scmp.ne.s32.totalorder %s1040_s5, %s761_s12  ;;  %s766_s8 = scalar_lea.hbm %s1172_s1, 256 }
  0x56   : > { %p767_p8 = scmp.lt.u32.totalorder %s1040_s5, %s1172_s1  ;;  %p768_p11 = scmp.lt.u32.totalorder %s766_s8, %s761_s12 }
  0x57   : > { %p764_p4 = pnand %p762_p7, %p733_p3  ;;  %p770_p0 = scmp.lt.u32.totalorder %s761_s12, %s1040_s5 }
  0x58   : > { %p769_p12 = por %p768_p11, %p767_p8 }
  0x59   : > { %p765_p6 = pneg %p764_p4 }
  0x5a   : > { %p771_p5 = por %p770_p0, %p769_p12 }
  0x5c   : > { %p772_p9 = pnand %p771_p5, %p765_p6 }
  0x5e   : > { %775 = shalt.err (!%p772_p9)
}
  0x5f   : > { %s776_s6 = scalar_lea.vmem %s224_s29, 128  ;;  %s887_s11 = smov [#allocation5]  }
  0x60   : > { %p777_p1 = scmp.ne.s32.totalorder %s224_s29, %s776_s6  ;;  %s781_s13 = sshll.u32 %s887_s11, 4  ;;  %s782_s13 = int_to_ptr.vmem [resolvable:$false] %s781_s13 }
  0x61   : > { %s783_s9 = scalar_lea.vmem %s782_s13, 256  ;;  %p784_p4 = scmp.lt.s32.totalorder %s224_s29, %s782_s13 }
  0x62   : > { %p779_p2 = pnand %p777_p1, %p733_p3  ;;  %p785_p10 = scmp.lt.s32.totalorder %s783_s9, %s776_s6 }
  0x64   : > { %p780_p7 = pneg %p779_p2  ;;  %p786_p8 = por %p785_p10, %p784_p4 }
  0x66   : > { %p787_p11 = pnand %p786_p8, %p780_p7 }
  0x68   : > { %790 = shalt.err (!%p787_p11)
}
  0x69   : > { %638 = dma.hbm_to_vmem [thread:$0]  (!%p1033_p13), %s1040_s5, 128, %s224_s29, %s213_s30  }
  0x6a   : > { %p1194_p6 = scmp.ne.s32.totalorder %s1186_s25, 0 }
  0x6b   : > { %s1093_s10 = sand.u32 (!%p1194_p6), 1, %s865_s16   ;;  %p1195_p10 = scmp.ne.s32.totalorder (!%p1194_p6), %s1184_s23, 0 }
  0x6c   : > { %232 = sbr.rel (%p1194_p6) target bundleno = 568 (0x238), region = 36  ;;  %s1096_s2 = sshll.u32 (!%p1194_p6), %s1093_s10, 3 }
  0x6d   : > { %s235_s12 = scalar_lea.sflag (!%p1194_p6), [#allocation3], %s1093_s10  ;;  %s238_s22 = scalar_lea.vmem (!%p1194_p6), [#allocation2], %s1096_s2 }
  0x73   : > { %844 = dma.done.wait (%p1195_p10), %s235_s12, 128  }
  0x74   : > { %846 = vsyncadd (%p1195_p10), %s235_s12, 4294967168  ;;  %s243_s25 = sand.u32 1, %s948_s21   ;;  %s247_s5 = scalar_lea.vmem [#allocation5], %s1096_s2 }
  0x75   : > { %s244_s14 = scalar_lea.sflag [#allocation6], %s243_s25 }
  0x76   : > { %848 = dma.done.wait (%p1195_p10), %s244_s14, 128  }
  0x77   : > { %850 = vsyncadd (%p1195_p10), %s244_s14, 4294967168  ;;  %p1196_p13 = scmp.eq.s32.totalorder %s948_s21, 0 }
  0x79   : > { %852 = dma.done.wait (%p1196_p13), [#allocation6], 256   ;;  %p1197_p3 = pmov %p1196_p13 }
  0x7a   : > { %v888_v0 = vmov 0.0   ;;  %vm889_vm0 = vmmov 0   ;;  %v890_v1 = vmov 0.0|0.0   ;;  %vm286_vm1 = vcmask 64512   ;;  %v282_v2 = vld [vmem:[%s247_s5] sm:$0xff]  ;;  %v281_v3 = vld [vmem:[%s238_s22] sm:$0xff] }
  0x7b   : > { %854 = vsyncadd (%p1197_p3), [#allocation6], 4294967040  ;;  %603 = vmatprep.subr.mxu0 %v888_v0  ;;  %605 = vmatprep.mubr.msk.f32.mxu0 %vm889_vm0, %v888_v0  ;;  %v283_v4 = vld [vmem:[#allocation7] sm:$0xff]  ;;  %v284_v5 = vld [vmem:[#allocation7 + $0x8] sm:$0xff]  ;;  %v434_v7 = vsel %vm286_vm1, %v281_v3, 0.0  ;;  %vm360_vm2 = vcmask 130048  }
  0x7c   : > { %615 = vmatprep.subr.bf16.mxu1 %v890_v1  ;;  %612 = vmatprep.mubr.msk.f32.mxu1 %vm889_vm0, %v888_v0  ;;  %v616_v6 = vpack.c.bf16 %v284_v5, %v283_v4  ;;  %v593_v15 = vld [vmem:[%s1174_s3] ss:$0 sm:$0xff]  ;;  %s595_s29 = sshll.u32 %s873_s18, 7  ;;  %s280_s30 = scalar_lea.vmem [#allocation8], %s1096_s2 }
  0x7d   : > { %604 = vmatpush3.msra.mxu0 %v282_v2  ;;  %435 = vadd.xlane.f32.xlu0 %v434_v7  ;;  %s465_s27 = sshll.u32 %s280_s30, 4  ;;  %s1122_s19 = scalar_lea.hbm %s1175_s4, %s595_s29  ;;  %s1124_s27 = int_to_ptr.vmem [resolvable:$true] %s465_s27 }
  0x7e   : > { %606 = vmatmul.mubr.msk.f32.vlgmr.msra.gmra.mrb[0].mxu0 %vm286_vm1, %v281_v3  ;;  %617 = vmatpush3.bf16.msra.mxu1 %v616_v6  ;;  %s451_s6 = scalar_lea.sflag [#allocation4], %s1093_s10  ;;  %s791_s11 = scalar_lea.vmem %s1124_s27, 128 }
  0x7f   : > { %p792_p12 = scmp.ne.s32.totalorder %s1124_s27, %s791_s11  ;;  %p1198_p0 = scmp.ne.s32.totalorder %s1192_s28, 0 }
  0x80   : > { %s891_s18 = smov [#allocation8]  }
  0x81   : > { %p793_p5 = pnand %p792_p12, %p1198_p0  ;;  %s795_s13 = sshll.u32 %s891_s18, 4  ;;  %s796_s13 = int_to_ptr.vmem [resolvable:$false] %s795_s13 }
  0x82   : > { %s797_s9 = scalar_lea.vmem %s796_s13, 256  ;;  %p798_p1 = scmp.lt.s32.totalorder %s1124_s27, %s796_s13 }
  0x83   : > { %p794_p9 = pneg %p793_p5  ;;  %p799_p2 = scmp.lt.s32.totalorder %s797_s9, %s791_s11 }
  0x85   : > { %p800_p7 = por %p799_p2, %p798_p1 }
  0x87   : > { %p801_p4 = pnand %p800_p7, %p794_p9 }
 0x10a   : > { %v436_v10 = vpop.xlane.xlu0 %435 }
 0x10b   : > { %701 = vrcp.f32 %v436_v10 }
 0x115   : > { %v702_v11 = vpop.eup %701 }
 0x116   : > { %v438_v12 = vmul.f32 %v702_v11, %v436_v10 }
 0x118   : > { %v439_v13 = vsub.f32 2.0, %v438_v12 }
 0x11a   : > { %v440_v14 = vmul.f32 %v702_v11, %v439_v13 }
 0x151   : > { %v356_v8 = vpop.f32.mrb[0].mxu0 }
 0x152   : > { %v607_v9 = vpop.f32.mrb[1].mxu0  ;;  %613 = vmatmul.mubr.msk.f32.vlgmr.msra.gmra.mrb[0].mxu1 %vm360_vm2, %v356_v8 }
 0x225   : > { %v430_v16 = vpop.f32.mrb[0].mxu1 }
 0x226   : > { %v441_v17 = vmul.f32 %v440_v14, %v430_v16  ;;  %v614_v18 = vpop.f32.mrb[1].mxu1 }
 0x228   : > { %v448_v19 = vadd.f32 %v593_v15, %v441_v17 }
 0x22a   : > { %449 = vst [vmem:[%s280_s30] sm:$0xff] %v448_v19 }
 0x22b   : > { %804 = shalt.err (!%p801_p4)
}
 0x22c   : > { %s805_s10 = scalar_lea.hbm %s1122_s19, 128  ;;  %s809_s22 = scalar_lea.hbm %s1175_s4, 256 }
 0x22d   : > { %p806_p8 = scmp.ne.s32.totalorder %s1122_s19, %s805_s10  ;;  %p810_p10 = scmp.lt.u32.totalorder %s1122_s19, %s1175_s4 }
 0x22e   : > { %p811_p13 = scmp.lt.u32.totalorder %s809_s22, %s805_s10  ;;  %p813_p12 = scmp.lt.u32.totalorder %s805_s10, %s1122_s19 }
 0x22f   : > { %p807_p11 = pnand %p806_p8, %p1198_p0 }
 0x230   : > { %p812_p3 = por %p811_p13, %p810_p10 }
 0x231   : > { %p808_p6 = pneg %p807_p11 }
 0x232   : > { %p814_p5 = por %p813_p12, %p812_p3 }
 0x234   : > { %p815_p9 = pnand %p814_p5, %p808_p6 }
 0x236   : > { %818 = shalt.err (!%p815_p9)
}
 0x237   : > { %626 = dma.vmem_to_hbm [thread:$0]  (%p1198_p0), %s1124_s27, 128, %s1122_s19, %s451_s6  }
 0x238 PF: > { %s477_s5 = sand.u32 1, %s861_s15   ;;  %p1199_p1 = scmp.ne.s32.totalorder %s1185_s24, 0 }
 0x239   : > { %p1200_p2 = scmp.ge.s32.totalorder %s881_s20, 2  ;;  %s478_s21 = scalar_lea.sflag [#allocation4], %s477_s5 }
 0x23b   : > { %p640_p7 = pnand %p1200_p2, %p1199_p1 }
 0x23d   : > { %856 = dma.done.wait (!%p640_p7), %s478_s21, 128  }
 0x23e   : > { %858 = vsyncadd (!%p640_p7), %s478_s21, 4294967168  ;;  %s23_s20 = sadd.s32 1, %s881_s20   ;;  %s1201_s18 = sld [smem:[#allocation13_spill]] }
 0x23f   : > { %p20_p4 = scmp.ge.s32.totalorder %s23_s20, 4   ;;  %s1202_s19 = sld [smem:[#allocation14_spill]] }
 0x240   : > { %s1203_s15 = smov %s865_s16  ;;  %s1204_s16 = smov %s869_s17 }
 0x241   : > { %s1205_s17 = smov %s1020_s7  ;;  %22 = sbr.rel (!%p20_p4) target bundleno = 10 (0xa), region = 98 }
 0x248   :  { %483 = vsyncpa [#allocation3], 1 }
 0x249   :  { %485 = vsyncpa [#allocation3 + $0x1], 1 }
 0x24a   :  { %486 = vsyncpa [#allocation6], 1 }
 0x24b   :  { %488 = vsyncpa [#allocation6 + $0x1], 1 }
 0x24c   :  { %489 = vsyncpa [#allocation4], 1 }
 0x24d   :  { %491 = vsyncpa [#allocation4 + $0x1], 1 }

</bundles_post_ra>
